<compile_context>
chip_gen: v7x
topology: tpu7x:2x2x1
jax: 0.10.0
libtpu: 0.0.40
codegen_flags: <defaults>
</compile_context>

<pallas_src>
import functools
import math

import jax
import jax.numpy as jnp
from jax.experimental import pallas as pl
from jax.experimental.pallas import tpu as pltpu


_VMEM_BUDGET = 24 * 1024 * 1024   # target for our double-buffered tiles
_VMEM_LIMIT = 32 * 1024 * 1024    # scoped VMEM limit we request


def _round_up(x, m):
    return ((x + m - 1) // m) * m


def _min_sublane(dtype):
    itemsize = jnp.dtype(dtype).itemsize
    return {4: 8, 2: 16, 1: 32}.get(itemsize, 8)


def _activation_fn(name):
    if name == "relu":
        return lambda x: jnp.maximum(x, 0.0)
    if name == "lrelu":
        return lambda x: jnp.where(x >= 0, x, 0.2 * x)
    if name == "tanh":
        return jnp.tanh
    if name == "selu":
        alpha = 1.6732632423543772
        scale = 1.0507009873554805
        return lambda x: scale * jnp.where(x >= 0, x, alpha * (jnp.exp(x) - 1.0))
    if name == "none":
        return lambda x: x
    # TODO(synk): 'prelu' needs a learnable slope parameter; not implemented.
    raise ValueError(f"Unsupported activation: {name}")


def _pick_tile(total, target, granule):
    """Largest multiple of `granule` that divides `total` and is <= target."""
    best = granule
    cap = min(target, total)
    t = granule
    while t <= cap:
        if total % t == 0:
            best = t
        t += granule
    return best


def _linear_block_kernel(x_ref, w_ref, b_ref, o_ref, *, act):
    # x_ref: (tm, K)   w_ref: (K, tn)   b_ref: (1, tn)   o_ref: (tm, tn)
    # Single fused step: MXU matmul with f32 accumulation, VPU bias add +
    # activation, one lane-dense store. No K loop, no accumulator scratch.
    acc = jnp.dot(x_ref[...], w_ref[...], preferred_element_type=jnp.float32)
    acc = acc + b_ref[...].astype(jnp.float32)
    o_ref[...] = act(acc).astype(o_ref.dtype)


def prepare_linear_block_params(weight, bias, compute_dtype=None):
    """One-time parameter prep (hoisted out of the per-call path).

    weight: (output_dim, input_dim) in PyTorch nn.Linear layout.
    bias:   (output_dim,)
    Returns (w_kn, bias2d, out_dim) with w_kn: (K, N_pad), bias2d: (1, N_pad),
    N_pad a multiple of 128 (lane-dense stores in the kernel).
    """
    out_dim, _ = weight.shape
    n_pad = _round_up(out_dim, 128)
    w_kn = jnp.pad(jnp.transpose(weight), ((0, 0), (0, n_pad - out_dim)))
    if compute_dtype is not None:
        w_kn = w_kn.astype(compute_dtype)
    bias2d = jnp.pad(bias.reshape(1, -1), ((0, 0), (0, n_pad - out_dim)))
    return w_kn, bias2d, out_dim


def linear_block_forward(x, w_kn, bias2d, out_dim, *, activation="relu",
                         norm="none", tm=512, tn=512, compute_dtype=None,
                         use_pallas=None):
    """x: (..., input_dim) -> (..., output_dim). w_kn/bias2d from
    prepare_linear_block_params."""
    # TODO(synk): norm='bn'/'in'/'ln' (running stats / learnable affine) are
    # not implemented; the default LinearBlock(norm='none') path is covered.
    assert norm == "none", "only norm='none' is implemented"
    act = _activation_fn(activation)

    in_dim, n_pad = w_kn.shape
    assert x.shape[-1] == in_dim
    out_dtype = x.dtype

    lead = x.shape[:-1]
    m = math.prod(lead) if lead else 1
    x2 = x.reshape(m, in_dim)
    if compute_dtype is not None:
        x2 = x2.astype(compute_dtype)

    in_bytes = jnp.dtype(x2.dtype).itemsize
    out_bytes = jnp.dtype(out_dtype).itemsize
    b_bytes = jnp.dtype(bias2d.dtype).itemsize

    def _fallback():
        # Plain XLA path for tiny problems (pallas_call overhead dominates)
        # or when K does not fit VMEM-resident.
        y = jnp.dot(x2, w_kn, preferred_element_type=jnp.float32)
        y = act(y + bias2d.astype(jnp.float32)).astype(out_dtype)
        return y[:, :out_dim].reshape(*lead, out_dim)

    # Dtype-aware sublane minimum (8 f32 / 16 bf16 / 32 int8) for M tiling.
    sub = max(_min_sublane(x2.dtype), _min_sublane(out_dtype))

    tm_eff = min(tm, _round_up(m, sub))
    tn_eff = _pick_tile(n_pad, tn, 128)

    def vmem_bytes(tm_, tn_):
        # double-buffered x, w, out tiles (+ bias, negligible)
        return (2 * (tm_ * in_dim + in_dim * tn_) * in_bytes
                + 2 * tm_ * tn_ * out_bytes + 2 * tn_ * b_bytes)

    # Shrink tiles until the working set fits the VMEM budget.
    while (vmem_bytes(tm_eff, tn_eff) > _VMEM_BUDGET
           and (tm_eff > sub or tn_eff > 128)):
        if tm_eff >= tn_eff and tm_eff > sub:
            tm_eff = max(sub, _round_up(tm_eff // 2, sub))
        elif tn_eff > 128:
            tn_eff = _pick_tile(n_pad, max(128, tn_eff // 2), 128)
        else:
            break

    fits_vmem = vmem_bytes(tm_eff, tn_eff) <= _VMEM_BUDGET
    tiny = (m * in_dim * out_dim) < (1 << 18)
    if use_pallas is None:
        use_pallas = fits_vmem and not tiny
    if use_pallas and not fits_vmem:
        # TODO(synk): very large K needs a K-tiled (3-D grid + accumulator)
        # kernel; fall back to XLA for that regime.
        use_pallas = False
    if not use_pallas:
        return _fallback()

    mp = _round_up(m, tm_eff)
    xp = jnp.pad(x2, ((0, mp - m), (0, 0))) if mp != m else x2

    grid_m = mp // tm_eff
    grid_n = n_pad // tn_eff

    # v7x has 2 TensorCores per chip: avoid a 1x1 grid when N allows a split.
    if grid_m == 1 and grid_n == 1 and n_pad >= 256:
        tn_eff = _pick_tile(n_pad, n_pad // 2, 128)
        grid_n = n_pad // tn_eff

    flops = 2 * mp * n_pad * in_dim
    trans = mp * n_pad if activation in ("tanh", "selu") else 0
    bytes_acc = ((mp * in_dim + in_dim * n_pad) * in_bytes
                 + mp * n_pad * out_bytes + n_pad * b_bytes)

    kernel = functools.partial(_linear_block_kernel, act=act)

    out = pl.pallas_call(
        kernel,
        out_shape=jax.ShapeDtypeStruct((mp, n_pad), out_dtype),
        grid_spec=pltpu.PrefetchScalarGridSpec(
            num_scalar_prefetch=0,
            grid=(grid_m, grid_n),
            in_specs=[
                pl.BlockSpec((tm_eff, in_dim), lambda i, j: (i, 0)),  # x strip
                pl.BlockSpec((in_dim, tn_eff), lambda i, j: (0, j)),  # w strip
                pl.BlockSpec((1, tn_eff), lambda i, j: (0, j)),       # bias
            ],
            out_specs=pl.BlockSpec((tm_eff, tn_eff), lambda i, j: (i, j)),
        ),
        compiler_params=pltpu.CompilerParams(
            dimension_semantics=("parallel", "parallel"),
            vmem_limit_bytes=_VMEM_LIMIT,
        ),
        cost_estimate=pl.CostEstimate(
            flops=flops, transcendentals=trans, bytes_accessed=bytes_acc),
    )(xp, w_kn, bias2d)

    return out[:m, :out_dim].reshape(*lead, out_dim)


if __name__ == "__main__":
    key = jax.random.PRNGKey(0)
    k_x, k_w, k_b = jax.random.split(key, 3)

    batch, seq, input_dim, output_dim = 2, 8, 32, 32

    x = jax.random.normal(k_x, (batch, seq, input_dim), dtype=jnp.float32)
    # nn.Linear default init: U(-1/sqrt(in), 1/sqrt(in)) for weight and bias.
    bound = 1.0 / math.sqrt(input_dim)
    weight = jax.random.uniform(k_w, (output_dim, input_dim), jnp.float32,
                                minval=-bound, maxval=bound)
    bias = jax.random.uniform(k_b, (output_dim,), jnp.float32,
                              minval=-bound, maxval=bound)

    # One-time parameter prep (hoisted out of the per-call path).
    w_kn, b2d, odim = prepare_linear_block_params(weight, bias)

    # Force the Pallas path (the auto-router would use the XLA fallback for a
    # problem this tiny).
    out = linear_block_forward(x, w_kn, b2d, odim, activation="relu",
                               norm="none", use_pallas=True)
    out = jax.block_until_ready(out)

    # Pure-JAX reference of the default LinearBlock forward: relu(x W^T + b).
    ref = jnp.maximum(jnp.einsum("bsk,nk->bsn", x, weight) + bias, 0.0)
    assert out.shape == (batch, seq, output_dim), out.shape
    assert jnp.allclose(out, ref, atol=1e-2, rtol=1e-2), "mismatch vs reference"

    print("KERNEL_OK")
</pallas_src>

<mosaic_0001>
module attributes {stable_mosaic.version = 11 : i64} {
  func.func @_linear_block_kernel(%arg0: i32, %arg1: i32, %arg2: memref<16x32xf32, #tpu.memory_space<vmem>>, %arg3: memref<32x128xf32, #tpu.memory_space<vmem>>, %arg4: memref<1x128xf32, #tpu.memory_space<vmem>>, %arg5: memref<16x128xf32, #tpu.memory_space<vmem>>) attributes {dimension_semantics = [#tpu.dimension_semantics<parallel>, #tpu.dimension_semantics<parallel>], iteration_bounds = array<i64: 1, 1>, scalar_prefetch = 0 : i64, scratch_operands = 0 : i64, tpu.core_type = #tpu.core_type<tc>, window_params = [{transform_indices = @transform_0, window_bounds = array<i64: 16, 32>}, {transform_indices = @transform_1, window_bounds = array<i64: 32, 128>}, {transform_indices = @transform_2, window_bounds = array<i64: 1, 128>}, {transform_indices = @transform_3, window_bounds = array<i64: 16, 128>}]} {
    %c0 = arith.constant 0 : index
    %c0_0 = arith.constant 0 : index
    %0 = vector.load %arg2[%c0, %c0_0] : memref<16x32xf32, #tpu.memory_space<vmem>>, vector<16x32xf32>
    %c0_1 = arith.constant 0 : index
    %c0_2 = arith.constant 0 : index
    %1 = vector.load %arg3[%c0_1, %c0_2] : memref<32x128xf32, #tpu.memory_space<vmem>>, vector<32x128xf32>
    %cst = arith.constant dense<0.000000e+00> : vector<16x128xf32>
    %2 = tpu.matmul %0, %1, %cst {dimension_numbers = #tpu.dot_dimension_numbers<[1], [0], [0], [1], [0, 0, 1, 1], [], []>} : vector<16x32xf32>, vector<32x128xf32>, vector<16x128xf32> -> vector<16x128xf32>
    %c0_3 = arith.constant 0 : index
    %c0_4 = arith.constant 0 : index
    %3 = vector.load %arg4[%c0_3, %c0_4] : memref<1x128xf32, #tpu.memory_space<vmem>>, vector<1x128xf32>
    %4 = vector.broadcast %3 : vector<1x128xf32> to vector<16x128xf32>
    %5 = arith.addf %2, %4 : vector<16x128xf32>
    %cst_5 = arith.constant 0.000000e+00 : f32
    %6 = vector.broadcast %cst_5 : f32 to vector<16x128xf32>
    %7 = arith.maximumf %5, %6 : vector<16x128xf32>
    %c0_6 = arith.constant 0 : index
    %c0_7 = arith.constant 0 : index
    %8 = vector.load %arg5[%c0_6, %c0_7] : memref<16x128xf32, #tpu.memory_space<vmem>>, vector<16x128xf32>
    tpu.vector_store %arg5[%c0_6, %c0_7], %7 {strides = array<i32>} : memref<16x128xf32, #tpu.memory_space<vmem>>, vector<16x128xf32>,
    return
  }
  func.func @transform_0(%arg0: i32, %arg1: i32) -> (i32, i32) {
    %c0_i32 = arith.constant 0 : i32
    %c0_i32_0 = arith.constant 0 : i32
    return %arg0, %c0_i32 : i32, i32
  }
  func.func @transform_1(%arg0: i32, %arg1: i32) -> (i32, i32) {
    %c0_i32 = arith.constant 0 : i32
    %c0_i32_0 = arith.constant 0 : i32
    return %c0_i32, %arg1 : i32, i32
  }
  func.func @transform_2(%arg0: i32, %arg1: i32) -> (i32, i32) {
    %c0_i32 = arith.constant 0 : i32
    %c0_i32_0 = arith.constant 0 : i32
    return %c0_i32, %arg1 : i32, i32
  }
  func.func @transform_3(%arg0: i32, %arg1: i32) -> (i32, i32) {
    %c0_i32 = arith.constant 0 : i32
    return %arg0, %arg1 : i32, i32
  }
}

</mosaic_0001>

<bundles_post_ra>
// kernel: tpu_custom_call.1
= control target key start
LH: loop header
LB: loop body
LE: loop exit
PB: predicated region body
PF: predicated region fallthrough
CT: control target
= control target key end

     0   :  { %8 = vsyncpa [#allocation3], 0  ;;  %s338_s0 = inlined_call_operand.hbm [shape: f32[16,32], index: 0, kind: input, shape index: {}]   ;;  %s339_s1 = inlined_call_operand.hbm [shape: f32[32,128], index: 1, kind: input, shape index: {}]   ;;  %s340_s2 = inlined_call_operand.vmem [shape: f32[1,128], index: 2, kind: input, shape index: {}]   ;;  %s341_s3 = inlined_call_operand.hbm [shape: f32[16,128], index: 3, kind: output, shape index: {}]  }
   0x1   :  { %9 = vsyncpa [#allocation6], 0 }
   0x2   :  { %10 = vsyncpa [#allocation4], 0  ;;  %s265_s12 = smov [#allocation2]   ;;  %s193_s16 = scalar_lea.hbm %s338_s0, 256 }
   0x3   :  { %s16_s13 = sshll.u32 %s265_s12, 4  ;;  %p194_p0 = scmp.ne.s32.totalorder %s338_s0, %s193_s16  ;;  %s17_s13 = int_to_ptr.vmem [resolvable:$true] %s16_s13 }
   0x4   :  { %p197_p1 = scmp.lt.u32.totalorder %s193_s16, %s338_s0 }
   0x6   :  { %p199_p2 = pnand %p197_p1, %p194_p0 }
   0x8   :  { %202 = shalt.err (!%p199_p2)
}
   0x9   :  { %s203_s21 = scalar_lea.vmem %s17_s13, 256  ;;  %p208_p4 = scmp.lt.s32.totalorder %s17_s13, %s17_s13 }
   0xa   :  { %p204_p3 = scmp.ne.s32.totalorder %s17_s13, %s203_s21  ;;  %p209_p5 = scmp.lt.s32.totalorder %s203_s21, %s203_s21 }
   0xc   :  { %p210_p6 = por %p209_p5, %p208_p4 }
   0xe   :  { %p211_p7 = pnand %p210_p6, %p204_p3 }
  0x10   :  { %214 = shalt.err (!%p211_p7)
}
  0x11   :  { %s266_s22 = smov 128   ;;  %s267_s23 = smov 8  }
  0x12   :  { %22 = dma.hbm_to_vmem [thread:$0]  %s338_s0, 256, %s17_s13, [#allocation3], %s266_s22, %s266_s22, %s267_s23  }
  0x13   :  { %s268_s26 = smov [#allocation5]   ;;  %s215_s30 = scalar_lea.hbm %s339_s1, 512 }
  0x14   :  { %s28_s27 = sshll.u32 %s268_s26, 4  ;;  %p216_p8 = scmp.ne.s32.totalorder %s339_s1, %s215_s30  ;;  %s29_s27 = int_to_ptr.vmem [resolvable:$true] %s28_s27 }
  0x15   :  { %p219_p9 = scmp.lt.u32.totalorder %s215_s30, %s339_s1 }
  0x17   :  { %p221_p10 = pnand %p219_p9, %p216_p8 }
  0x19   :  { %224 = shalt.err (!%p221_p10)
}
  0x1a   :  { %s225_s8 = scalar_lea.vmem %s29_s27, 512  ;;  %p230_p12 = scmp.lt.s32.totalorder %s29_s27, %s29_s27 }
  0x1b   :  { %p226_p11 = scmp.ne.s32.totalorder %s29_s27, %s225_s8  ;;  %p231_p13 = scmp.lt.s32.totalorder %s225_s8, %s225_s8 }
  0x1d   :  { %p232_p0 = por %p231_p13, %p230_p12 }
  0x1f   :  { %p233_p1 = pnand %p232_p0, %p226_p11 }
  0x21   :  { %236 = shalt.err (!%p233_p1)
}
  0x22   :  { %34 = dma.hbm_to_vmem [thread:$0]  %s339_s1, 512, %s29_s27, [#allocation6], %s266_s22, %s266_s22, %s267_s23  }
  0x23   :  { %259 = dma.done.wait [#allocation3], 256  }
  0x24   :  { %260 = vsyncadd [#allocation3], 4294967040 }
  0x25   :  { %261 = dma.done.wait [#allocation6], 512  }
  0x26   :  { %262 = vsyncadd [#allocation6], 4294966784  ;;  %vm56_vm0 = vcmask 261120   ;;  %v45_v0 = vld [vmem:[#allocation5] sm:$0xff]  ;;  %v46_v1 = vld [vmem:[#allocation5 + $0x8] sm:$0xff]  ;;  %s269_s11 = smov [#allocation7]  }
  0x27   :  { %v47_v2 = vld [vmem:[#allocation5 + $0x10] sm:$0xff]  ;;  %v180_v3 = vpack.c.bf16 %v46_v1, %v45_v0  ;;  %v48_v4 = vld [vmem:[#allocation5 + $0x18] sm:$0xff]  ;;  %s147_s12 = sshll.u32 %s269_s11, 4  ;;  %s148_s12 = int_to_ptr.vmem [resolvable:$true] %s147_s12 }
  0x28   :  { %v43_v5 = vld [vmem:[#allocation2] sm:$0xff]  ;;  %v184_v6 = vpack.c.bf16 %v48_v4, %v47_v2  ;;  %v44_v7 = vld [vmem:[#allocation2 + $0x8] sm:$0xff]  ;;  %s237_s13 = scalar_lea.vmem %s148_s12, 256  ;;  %p242_p3 = scmp.lt.s32.totalorder %s148_s12, %s148_s12 }
  0x29   :  { %177 = vmatprep.mubr.msk.f32.mxu0 %vm56_vm0, %v43_v5  ;;  %181 = vmatprep.subr.bf16.mxu0 %v180_v3  ;;  %v160_v8 = vld [vmem:[%s340_s2] ss:$0 sm:$0xff]  ;;  %p238_p2 = scmp.ne.s32.totalorder %s148_s12, %s237_s13  ;;  %p243_p4 = scmp.lt.s32.totalorder %s237_s13, %s237_s13 }
  0x2a   :  { %183 = vmatpush3.bf16.msra.mxu0 %v180_v3 }
  0x2b   :  { %185 = vmatprep.subr.bf16.mxu0 %v184_v6  ;;  %p244_p5 = por %p243_p4, %p242_p3 }
  0x2d   :  { %p245_p6 = pnand %p244_p5, %p238_p2 }
  0x2e   :  { %187 = vmatpush3.bf16.msra.mxu0 %v184_v6 }
  0x31   :  { %178 = vmatmul.mubr.msk.f32.vlgmr.msra.gmra.mrb[0].mxu0 %vm56_vm0, %v44_v7 }
 0x104   :  { %v179_v9 = vpop.f32.mrb[0].mxu0 }
 0x105   :  { %v135_v10 = vadd.f32 %v179_v9, %v160_v8  ;;  %v129_v11 = vpop.f32.mrb[1].mxu0 }
 0x106   :  { %v130_v12 = vadd.f32 %v160_v8, %v129_v11 }
 0x107   :  { %v139_v13 = vmax.f32 %v135_v10, 0.0 }
 0x108   :  { %v138_v14 = vmax.f32 %v130_v12, 0.0 }
 0x109   :  { %141 = vst [vmem:[#allocation7 + $0x8] sm:$0xff] %v139_v13 }
 0x10a   :  { %140 = vst [vmem:[#allocation7] sm:$0xff] %v138_v14 }
 0x10b   :  { %248 = shalt.err (!%p245_p6)
}
 0x10c   :  { %s249_s15 = scalar_lea.hbm %s341_s3, 256 }
 0x10d   :  { %p250_p7 = scmp.ne.s32.totalorder %s341_s3, %s249_s15  ;;  %p253_p8 = scmp.lt.u32.totalorder %s249_s15, %s341_s3 }
 0x10f   :  { %p255_p9 = pnand %p253_p8, %p250_p7 }
 0x111   :  { %258 = shalt.err (!%p255_p9)
}
 0x112   :  { %153 = dma.vmem_to_hbm [thread:$0]  %s148_s12, 256, %s341_s3, [#allocation4], %s266_s22, %s266_s22, %s267_s23  }
 0x113   :  { %263 = dma.done.wait [#allocation4], 256  }
 0x114   :  { %264 = vsyncadd [#allocation4], 4294967040 }
 0x115   :  { %157 = vsyncpa [#allocation3], 1 }
 0x116   :  { %158 = vsyncpa [#allocation6], 1 }
 0x117   :  { %159 = vsyncpa [#allocation4], 1 }

</bundles_post_ra>
